<compile_context>
chip_gen: v6e
topology: v6e:2x2x1
jax: 0.10.0
libtpu: 0.0.40
codegen_flags: <defaults>
</compile_context>

<pallas_src>
import jax
import jax.numpy as jnp
from jax.experimental import pallas as pl
from jax.experimental.pallas import tpu as pltpu


def _round_up(x, m):
    return ((x + m - 1) // m) * m


def _mlp_kernel(x_ref, w1_ref, b1_ref, w2_ref, b2_ref, o_ref):
    # x_ref:  (B_tile, C_in,  T)   channels on sublanes, pixels on lanes
    # w1_ref: (C_hid, C_in)        fc1 weight
    # b1_ref: (C_hid, 1)           fc1 bias (broadcasts over lanes)
    # w2_ref: (C_out, C_hid)       fc2 weight
    # b2_ref: (C_out, 1)           fc2 bias
    # o_ref:  (B_tile, C_out, T)
    b_tile, c_in, _ = x_ref.shape
    w1 = w1_ref[...].astype(jnp.float32)
    b1 = b1_ref[...].astype(jnp.float32)
    w2 = w2_ref[...].astype(jnp.float32)
    b2 = b2_ref[...].astype(jnp.float32)

    for b in range(b_tile):                      # small, statically unrolled
        xb = x_ref[b].astype(jnp.float32)        # (C_in, T)

        # fc1 on the VPU: with K=C_in tiny the MXU contraction depth would be
        # <2% utilized, so use an unrolled broadcast-FMA.  This VALU work
        # co-issues with fc2's MXU pushes on the vector-extended slot.
        h = w1[:, 0:1] * xb[0:1, :]              # (C_hid, T)
        for k in range(1, c_in):
            h = h + w1[:, k:k + 1] * xb[k:k + 1, :]
        h = jnp.clip(h + b1, 0.0, 6.0)           # bias + ReLU6
        # Dropout(p=0.0) is an identity in the forward pass.

        # fc2 on the MXU (K = C_hid), f32 accumulate.
        ob = jnp.dot(w2, h, preferred_element_type=jnp.float32) + b2
        o_ref[b] = ob.astype(o_ref.dtype)


def mlp_pallas(x_nchw, w1, b1, w2, b2, *,
               vmem_data_budget=16 << 20, max_batch_tile=8):
    """Fused 1x1-conv MLP.

    Args:
      x_nchw: (N, C_in, H, W) float32, PyTorch NCHW convention.
      w1: (C_hid, C_in, 1, 1)  fc1 conv weight.
      b1: (C_hid,)             fc1 bias.
      w2: (C_out, C_hid, 1, 1) fc2 conv weight.
      b2: (C_out,)             fc2 bias.
    Returns:
      (N, C_out, H, W) float32.
    """
    n, c_in, h, w = x_nchw.shape
    c_hid = w1.shape[0]
    c_out = w2.shape[0]
    hw = h * w

    # NCHW -> (N, C_in, H*W): pure (free) reshape.
    x3 = x_nchw.reshape(n, c_in, hw)
    w1_m = w1[:, :, 0, 0]              # (C_hid, C_in)
    w2_m = w2[:, :, 0, 0]              # (C_out, C_hid)
    b1_m = b1.reshape(c_hid, 1)
    b2_m = b2.reshape(c_out, 1)

    # --- Pixel tiling from a VMEM budget ---------------------------------
    # Per-pixel bytes per image in a step: double-buffered x & out plus the
    # materialized hidden (counted ~3x for broadcast temporaries).
    itemsize = 4  # f32 path
    bytes_per_px = itemsize * (2 * c_in + 2 * c_out + 3 * c_hid)
    max_px_per_step = max(128, (vmem_data_budget // bytes_per_px) // 128 * 128)

    hw_pad128 = _round_up(hw, 128)
    if hw_pad128 <= max_px_per_step:
        # Whole image fits one lane-dense tile (full-dim block is always legal).
        num_px_tiles = 1
        tile_hw = hw
    else:
        # Fewest tiles that fit the budget, split evenly; uneven tail handled
        # by Pallas store masking (no full-tensor pad or post-kernel slice).
        num_px_tiles = -(-hw_pad128 // max_px_per_step)
        tile_hw = _round_up(-(-hw // num_px_tiles), 128)
        num_px_tiles = -(-hw // tile_hw)

    # --- Batch folding / megacore ----------------------------------------
    # Fold images into a step (amortizes ~0.35 us/step) while keeping >=2
    # grid steps on a "parallel" axis so both v7x TensorCores get work.
    b_tile = 1
    if num_px_tiles == 1:
        b_cap = max(1, min(max_batch_tile, max_px_per_step // max(tile_hw, 1)))
        if n >= 2:
            b_cap = min(b_cap, n // 2)         # keep >=2 batch steps
        for d in range(min(b_cap, n), 0, -1):
            if n % d == 0:
                b_tile = d
                break
    if n == 1 and num_px_tiles == 1 and hw >= 256:
        # Single image, single tile: split pixels so both v7x cores work.
        tile_hw = _round_up(-(-hw // 2), 128)
        num_px_tiles = -(-hw // tile_hw)

    grid = (n // b_tile, num_px_tiles)

    out3 = pl.pallas_call(
        _mlp_kernel,
        out_shape=jax.ShapeDtypeStruct((n, c_out, hw), x_nchw.dtype),
        grid_spec=pltpu.PrefetchScalarGridSpec(
            num_scalar_prefetch=0,
            grid=grid,
            in_specs=[
                # x: tile over (batch, pixels); pixels lane-dense.
                pl.BlockSpec((b_tile, c_in, tile_hw), lambda b, p: (b, 0, p)),
                # Weights / biases: full arrays, constant index map (resident,
                # no per-step re-DMA).
                pl.BlockSpec((c_hid, c_in), lambda b, p: (0, 0)),
                pl.BlockSpec((c_hid, 1), lambda b, p: (0, 0)),
                pl.BlockSpec((c_out, c_hid), lambda b, p: (0, 0)),
                pl.BlockSpec((c_out, 1), lambda b, p: (0, 0)),
            ],
            out_specs=pl.BlockSpec((b_tile, c_out, tile_hw),
                                   lambda b, p: (b, 0, p)),
        ),
        compiler_params=pltpu.CompilerParams(
            dimension_semantics=("parallel", "parallel"),
            # Explicit budget: data footprint stays well under the v7x 32 MiB
            # scoped default; 32 MiB is also safe on v5e/v6e (128 MiB VMEM).
            vmem_limit_bytes=32 << 20,
        ),
    )(x3, w1_m, b1_m, w2_m, b2_m)

    # (N, C_out, H*W) -> NCHW is a free reshape (no slice: output is exact).
    return out3.reshape(n, c_out, h, w)


def mlp_reference(x_nchw, w1, b1, w2, b2):
    """Pure-JAX reference matching the PyTorch forward."""
    n, c_in, h, w = x_nchw.shape
    x_rows = jnp.transpose(x_nchw, (0, 2, 3, 1)).reshape(-1, c_in)
    h1 = x_rows @ jnp.transpose(w1[:, :, 0, 0]) + b1
    h1 = jnp.clip(h1, 0.0, 6.0)
    o = h1 @ jnp.transpose(w2[:, :, 0, 0]) + b2
    return o.reshape(n, h, w, -1).transpose(0, 3, 1, 2)


if __name__ == "__main__":
    key = jax.random.PRNGKey(0)
    k_x, k_w1, k_b1, k_w2, k_b2 = jax.random.split(key, 5)

    # Small shapes consistent with the module: batch=2, in=4, hidden=32,
    # out=4, spatial=16x16.
    N, C_IN, C_HID, C_OUT, H, W = 2, 4, 32, 4, 16, 16

    x = jax.random.normal(k_x, (N, C_IN, H, W), dtype=jnp.float32)
    w1 = jax.random.normal(k_w1, (C_HID, C_IN, 1, 1), dtype=jnp.float32) * 0.1
    b1 = jax.random.normal(k_b1, (C_HID,), dtype=jnp.float32) * 0.1
    w2 = jax.random.normal(k_w2, (C_OUT, C_HID, 1, 1), dtype=jnp.float32) * 0.1
    b2 = jax.random.normal(k_b2, (C_OUT,), dtype=jnp.float32) * 0.1

    out = jax.jit(mlp_pallas)(x, w1, b1, w2, b2)
    out = jax.block_until_ready(out)

    ref = mlp_reference(x, w1, b1, w2, b2)
    assert out.shape == (N, C_OUT, H, W), out.shape
    assert jnp.allclose(out, ref, atol=1e-5, rtol=1e-5), "mismatch vs reference"

    print("KERNEL_OK")
</pallas_src>

<mosaic_0001>
module attributes {stable_mosaic.version = 11 : i64} {
  func.func @_mlp_kernel(%arg0: i32, %arg1: i32, %arg2: memref<1x4x256xf32, #tpu.memory_space<vmem>>, %arg3: memref<32x4xf32, #tpu.memory_space<vmem>>, %arg4: memref<32x1xf32, #tpu.memory_space<vmem>>, %arg5: memref<4x32xf32, #tpu.memory_space<vmem>>, %arg6: memref<4x1xf32, #tpu.memory_space<vmem>>, %arg7: memref<1x4x256xf32, #tpu.memory_space<vmem>>) attributes {dimension_semantics = [#tpu.dimension_semantics<parallel>, #tpu.dimension_semantics<parallel>], iteration_bounds = array<i64: 2, 1>, scalar_prefetch = 0 : i64, scratch_operands = 0 : i64, tpu.core_type = #tpu.core_type<tc>, window_params = [{transform_indices = @transform_0, window_bounds = array<i64: 1, 4, 256>}, {pipeline_mode = #tpu.pipeline_mode<synchronous>, transform_indices = @transform_1, window_bounds = array<i64: 32, 4>}, {pipeline_mode = #tpu.pipeline_mode<synchronous>, transform_indices = @transform_2, window_bounds = array<i64: 32, 1>}, {pipeline_mode = #tpu.pipeline_mode<synchronous>, transform_indices = @transform_3, window_bounds = array<i64: 4, 32>}, {pipeline_mode = #tpu.pipeline_mode<synchronous>, transform_indices = @transform_4, window_bounds = array<i64: 4, 1>}, {transform_indices = @transform_5, window_bounds = array<i64: 1, 4, 256>}]} {
    %c0 = arith.constant 0 : index
    %c0_0 = arith.constant 0 : index
    %0 = vector.load %arg3[%c0, %c0_0] : memref<32x4xf32, #tpu.memory_space<vmem>>, vector<32x4xf32>
    %c0_1 = arith.constant 0 : index
    %c0_2 = arith.constant 0 : index
    %1 = vector.load %arg4[%c0_1, %c0_2] : memref<32x1xf32, #tpu.memory_space<vmem>>, vector<32x1xf32>
    %c0_3 = arith.constant 0 : index
    %c0_4 = arith.constant 0 : index
    %2 = vector.load %arg5[%c0_3, %c0_4] : memref<4x32xf32, #tpu.memory_space<vmem>>, vector<4x32xf32>
    %c0_5 = arith.constant 0 : index
    %c0_6 = arith.constant 0 : index
    %3 = vector.load %arg6[%c0_5, %c0_6] : memref<4x1xf32, #tpu.memory_space<vmem>>, vector<4x1xf32>
    %c0_7 = arith.constant 0 : index
    %c0_8 = arith.constant 0 : index
    %c0_9 = arith.constant 0 : index
    %4 = vector.load %arg2[%c0_7, %c0_8, %c0_9] : memref<1x4x256xf32, #tpu.memory_space<vmem>>, vector<1x4x256xf32>
    %5 = vector.shape_cast %4 : vector<1x4x256xf32> to vector<4x256xf32>
    %6 = vector.extract_strided_slice %0 {offsets = [0, 0], sizes = [32, 1], strides = [1, 1]} : vector<32x4xf32> to vector<32x1xf32>
    %7 = vector.extract_strided_slice %5 {offsets = [0, 0], sizes = [1, 256], strides = [1, 1]} : vector<4x256xf32> to vector<1x256xf32>
    %8 = vector.broadcast %6 : vector<32x1xf32> to vector<32x256xf32>
    %9 = vector.broadcast %7 : vector<1x256xf32> to vector<32x256xf32>
    %10 = arith.mulf %8, %9 : vector<32x256xf32>
    %11 = vector.extract_strided_slice %0 {offsets = [0, 1], sizes = [32, 1], strides = [1, 1]} : vector<32x4xf32> to vector<32x1xf32>
    %12 = vector.extract_strided_slice %5 {offsets = [1, 0], sizes = [1, 256], strides = [1, 1]} : vector<4x256xf32> to vector<1x256xf32>
    %13 = vector.broadcast %11 : vector<32x1xf32> to vector<32x256xf32>
    %14 = vector.broadcast %12 : vector<1x256xf32> to vector<32x256xf32>
    %15 = arith.mulf %13, %14 : vector<32x256xf32>
    %16 = arith.addf %10, %15 : vector<32x256xf32>
    %17 = vector.extract_strided_slice %0 {offsets = [0, 2], sizes = [32, 1], strides = [1, 1]} : vector<32x4xf32> to vector<32x1xf32>
    %18 = vector.extract_strided_slice %5 {offsets = [2, 0], sizes = [1, 256], strides = [1, 1]} : vector<4x256xf32> to vector<1x256xf32>
    %19 = vector.broadcast %17 : vector<32x1xf32> to vector<32x256xf32>
    %20 = vector.broadcast %18 : vector<1x256xf32> to vector<32x256xf32>
    %21 = arith.mulf %19, %20 : vector<32x256xf32>
    %22 = arith.addf %16, %21 : vector<32x256xf32>
    %23 = vector.extract_strided_slice %0 {offsets = [0, 3], sizes = [32, 1], strides = [1, 1]} : vector<32x4xf32> to vector<32x1xf32>
    %24 = vector.extract_strided_slice %5 {offsets = [3, 0], sizes = [1, 256], strides = [1, 1]} : vector<4x256xf32> to vector<1x256xf32>
    %25 = vector.broadcast %23 : vector<32x1xf32> to vector<32x256xf32>
    %26 = vector.broadcast %24 : vector<1x256xf32> to vector<32x256xf32>
    %27 = arith.mulf %25, %26 : vector<32x256xf32>
    %28 = arith.addf %22, %27 : vector<32x256xf32>
    %29 = vector.broadcast %1 : vector<32x1xf32> to vector<32x256xf32>
    %30 = arith.addf %28, %29 : vector<32x256xf32>
    %cst = arith.constant 0.000000e+00 : f32
    %cst_10 = arith.constant 6.000000e+00 : f32
    %31 = vector.broadcast %cst : f32 to vector<32x256xf32>
    %32 = arith.maximumf %31, %30 : vector<32x256xf32>
    %33 = vector.broadcast %cst_10 : f32 to vector<32x256xf32>
    %34 = arith.minimumf %33, %32 : vector<32x256xf32>
    %cst_11 = arith.constant dense<0.000000e+00> : vector<4x256xf32>
    %35 = tpu.matmul %2, %34, %cst_11 {dimension_numbers = #tpu.dot_dimension_numbers<[1], [0], [0], [1], [0, 0, 1, 1], [], []>} : vector<4x32xf32>, vector<32x256xf32>, vector<4x256xf32> -> vector<4x256xf32>
    %36 = vector.broadcast %3 : vector<4x1xf32> to vector<4x256xf32>
    %37 = arith.addf %35, %36 : vector<4x256xf32>
    %c0_12 = arith.constant 0 : index
    %c0_13 = arith.constant 0 : index
    %c0_14 = arith.constant 0 : index
    %38 = vector.load %arg7[%c0_12, %c0_13, %c0_14] : memref<1x4x256xf32, #tpu.memory_space<vmem>>, vector<1x4x256xf32>
    %39 = vector.shape_cast %38 : vector<1x4x256xf32> to vector<4x256xf32>
    %40 = vector.shape_cast %37 : vector<4x256xf32> to vector<1x4x256xf32>
    tpu.vector_store %arg7[%c0_12, %c0_13, %c0_14], %40 {strides = array<i32>} : memref<1x4x256xf32, #tpu.memory_space<vmem>>, vector<1x4x256xf32>,
    return
  }
  func.func @transform_0(%arg0: i32, %arg1: i32) -> (i32, i32, i32) {
    %c0_i32 = arith.constant 0 : i32
    %c0_i32_0 = arith.constant 0 : i32
    return %arg0, %c0_i32, %arg1 : i32, i32, i32
  }
  func.func @transform_1(%arg0: i32, %arg1: i32) -> (i32, i32) {
    %c0_i32 = arith.constant 0 : i32
    %c0_i32_0 = arith.constant 0 : i32
    %c0_i32_1 = arith.constant 0 : i32
    return %c0_i32, %c0_i32_0 : i32, i32
  }
  func.func @transform_2(%arg0: i32, %arg1: i32) -> (i32, i32) {
    %c0_i32 = arith.constant 0 : i32
    %c0_i32_0 = arith.constant 0 : i32
    %c0_i32_1 = arith.constant 0 : i32
    return %c0_i32, %c0_i32_0 : i32, i32
  }
  func.func @transform_3(%arg0: i32, %arg1: i32) -> (i32, i32) {
    %c0_i32 = arith.constant 0 : i32
    %c0_i32_0 = arith.constant 0 : i32
    %c0_i32_1 = arith.constant 0 : i32
    return %c0_i32, %c0_i32_0 : i32, i32
  }
  func.func @transform_4(%arg0: i32, %arg1: i32) -> (i32, i32) {
    %c0_i32 = arith.constant 0 : i32
    %c0_i32_0 = arith.constant 0 : i32
    %c0_i32_1 = arith.constant 0 : i32
    return %c0_i32, %c0_i32_0 : i32, i32
  }
  func.func @transform_5(%arg0: i32, %arg1: i32) -> (i32, i32, i32) {
    %c0_i32 = arith.constant 0 : i32
    %c0_i32_0 = arith.constant 0 : i32
    return %arg0, %c0_i32, %arg1 : i32, i32, i32
  }
}

</mosaic_0001>

<bundles_post_ra>
// kernel: mlp_pallas.1
= control target key start
LH: loop header
LB: loop body
LE: loop exit
PB: predicated region body
PF: predicated region fallthrough
CT: control target
= control target key end

     0   :  { %s807_s18 = smov 0   ;;  %s809_s19 = smov 0   ;;  %s933_s0 = inlined_call_operand.vmem [shape: f32[2,4,256], index: 0, kind: input, shape index: {}]   ;;  %s934_s1 = inlined_call_operand.vmem [shape: f32[32,4], index: 1, kind: input, shape index: {}]   ;;  %s935_s2 = inlined_call_operand.vmem [shape: f32[32,1], index: 2, kind: input, shape index: {}]   ;;  %s936_s3 = inlined_call_operand.vmem [shape: f32[4,32], index: 3, kind: input, shape index: {}]   ;;  %s937_s4 = inlined_call_operand.vmem [shape: f32[4,1], index: 4, kind: input, shape index: {}]   ;;  %s938_s5 = inlined_call_operand.vmem [shape: f32[2,4,256], index: 5, kind: output, shape index: {}]  }
   0x1   :  { %s811_s20 = smov 0  }
   0x2 LB: > { %s27_s21 = sadd.s32 1, %s766_s19  ;;  %p692_p0 = scmp.ge.s32.totalorder %s770_s20, 1  ;;  %s770_s20 = sphi %s811_s20, %s15_s20   ;;  %s766_s19 = sphi %s809_s19, %s940_s19   ;;  %s762_s18 = sphi %s807_s18, %s939_s18  }
   0x3   : > { %p29_p1 = scmp.ge.s32.totalorder %s27_s21, 2  ;;  %p208_p2 = scmp.lt.s32.totalorder %s770_s20, 3 }
   0x5   : > { %s942_s21 = smov (%p29_p1, %s27_s21), 0  ;;  %p209_p3 = pnand %p692_p0, %p208_p2 }
   0x6   : > { %p245_p4 = scmp.lt.s32.totalorder (!%p209_p3), %s762_s18, 1 }
   0x7   : > { %212 = sbr.rel (%p209_p3) target bundleno = 405 (0x195), region = 40 }
   0xc   : > { %v267_v0 = vld [vmem:[%s934_s1 + $0x18] sm:$0xff]  ;;  %v266_v1 = vld [vmem:[%s934_s1 + $0x10] sm:$0xff]  ;;  %v772_v2 = vmov 1   ;;  %v773_v3 = vmov 0   ;;  %v265_v4 = vld [vmem:[%s934_s1 + $0x8] sm:$0xff]  ;;  %v774_v5 = vmov 2   ;;  %v296_v19 = vlaneseq }
   0xd   : > { %731 = vset.pattern.permute.xlu0 %v772_v2  ;;  %733 = vset.pattern.permute.xlu1 %v773_v3  ;;  %v775_v6 = vmov 3   ;;  %v264_v7 = vld [vmem:[%s934_s1] sm:$0xff]  ;;  %v270_v8 = vld [vmem:[%s935_s2 + $0x10] sm:$0xff]  ;;  %v271_v10 = vld [vmem:[%s935_s2 + $0x18] sm:$0xff]  ;;  %v776_v13 = vmov 0.0   ;;  %s944_s18 = smov (!%p245_p4, %s762_s18), 1 }
   0xe   : > { %335 = vperm.xlu0 %731, %v267_v0   ;;  %287 = vperm.xlu1 %733, %v266_v1   ;;  %v273_v9 = vld [vmem:[%s937_s4] sm:$0xf]  ;;  %v269_v11 = vld [vmem:[%s935_s2 + $0x8] sm:$0xff]  ;;  %s700_s15 = sshll.u32 %s944_s18, 3  ;;  %v297_v21 = vshrl.u32 %v296_v19, 7  ;;  %vm521_vm0 = vcmask 261120  }
   0xf   : > { %v268_v12 = vld [vmem:[%s935_s2] sm:$0xff]  ;;  %589 = vmatprep.mubr.f32.mxu0 %v776_v13  ;;  %s252_s22 = scalar_lea.vmem %s933_s0, %s700_s15  ;;  %s262_s27 = scalar_lea.vmem %s938_s5, %s700_s15 }
  0x10   : > { %v344_v23 = vsub.s32 5, %v297_v21  ;;  %v340_v25 = vsub.s32 1, %v297_v21  ;;  %v302_v26 = vsub.s32 4, %v297_v21  ;;  %v298_v27 = vsub.s32 0, %v297_v21  ;;  %v274_v28 = vld [vmem:[%s252_s22] sm:$0xff] }
  0x11   : > { %v390_v30 = vsub.s32 2, %v297_v21  ;;  %v394_v31 = vsub.s32 6, %v297_v21  ;;  %v444_v34 = vsub.s32 7, %v297_v21  ;;  %v440_v38 = vsub.s32 3, %v297_v21 }
  0x12   : > { %732 = vset.pattern.permute.xlu0 %v773_v3  ;;  %734 = vset.pattern.permute.xlu1 %v772_v2  ;;  %v345_v29 = vrot.slane %v274_v28, %v344_v23  ;;  %v341_v32 = vrot.slane %v274_v28, %v340_v25  ;;  %v303_v36 = vrot.slane %v274_v28, %v302_v26 }
  0x13   : > { %292 = vperm.xlu0 %732, %v267_v0   ;;  %331 = vperm.xlu1 %734, %v266_v1   ;;  %v299_v37 = vrot.slane %v274_v28, %v298_v27  ;;  %v391_v40 = vrot.slane %v274_v28, %v390_v30  ;;  %v395_v41 = vrot.slane %v274_v28, %v394_v31 }
  0x14   : > { %v872_v39 = vrot.slane %v345_v29, %v340_v25  ;;  %v351_v42 = vrot.slane %v341_v32, %v340_v25  ;;  %v445_v43 = vrot.slane %v274_v28, %v444_v34  ;;  %v874_v44 = vrot.slane %v303_v36, %v298_v27 }
  0x15   : > { %v876_v46 = vrot.slane %v299_v37, %v298_v27  ;;  %v441_v48 = vrot.slane %v274_v28, %v440_v38  ;;  %v879_v50 = vrot.slane %v391_v40, %v390_v30  ;;  %v881_v51 = vrot.slane %v395_v41, %v390_v30 }
  0x16   : > { %v884_v55 = vrot.slane %v445_v43, %v440_v38 }
  0x17   : > { %735 = vset.pattern.permute.xlu1 %v774_v5  ;;  %282 = vperm.xlu0 %732, %v265_v4   ;;  %v451_v61 = vrot.slane %v441_v48, %v440_v38 }
  0x18   : > { %385 = vperm.xlu1 %735, %v267_v0  }
  0x1b   : > { %740 = vset.pattern.permute.xlu0 %v774_v5 }
  0x1c   : > { %736 = vset.pattern.permute.xlu1 %v772_v2  ;;  %377 = vperm.xlu0 %740, %v265_v4  }
  0x1d   : > { %327 = vperm.xlu1 %736, %v265_v4  }
  0x20   : > { %741 = vset.pattern.permute.xlu0 %v775_v6 }
  0x21   : > { %737 = vset.pattern.permute.xlu1 %v774_v5  ;;  %435 = vperm.xlu0 %741, %v267_v0  }
  0x22   : > { %381 = vperm.xlu1 %737, %v266_v1  }
  0x25   : > { %427 = vperm.xlu0 %741, %v265_v4  }
  0x26   : > { %738 = vset.pattern.permute.xlu1 %v773_v3 }
  0x27   : > { %277 = vperm.xlu1 %738, %v264_v7  }
  0x29   : > { %746 = vset.pattern.permute.xlu0 %v773_v3 }
  0x2a   : > { %484 = vperm.xlu0 %746, %v270_v8  }
  0x2b   : > { %739 = vset.pattern.permute.xlu1 %v772_v2 }
  0x2c   : > { %323 = vperm.xlu1 %739, %v264_v7  }
  0x2e   : > { %518 = vperm.xlu0 %746, %v273_v9  }
  0x30   : > { %742 = vset.pattern.permute.xlu1 %v775_v6 }
  0x31   : > { %431 = vperm.xlu1 %742, %v266_v1  }
  0x35   : > { %743 = vset.pattern.permute.xlu1 %v774_v5 }
  0x36   : > { %373 = vperm.xlu1 %743, %v264_v7  }
  0x3a   : > { %744 = vset.pattern.permute.xlu1 %v773_v3 }
  0x3b   : > { %489 = vperm.xlu1 %744, %v271_v10  }
  0x3f   : > { %745 = vset.pattern.permute.xlu1 %v775_v6 }
  0x40   : > { %423 = vperm.xlu1 %745, %v264_v7  }
  0x44   : > { %747 = vset.pattern.permute.xlu1 %v773_v3 }
  0x45   : > { %479 = vperm.xlu1 %747, %v269_v11  }
  0x49   : > { %474 = vperm.xlu1 %747, %v268_v12  }
  0x89   : > { %v288_v14 = vpop.permute.xlu1 %287  ;;  %v336_v16 = vpop.permute.xlu0 %335 }
  0x8a   : > { %v362_v52 = vmul.f32 %v351_v42, %v336_v16  ;;  %v319_v56 = vmul.f32 %v874_v44, %v288_v14  ;;  %v363_v57 = vmul.f32 %v872_v39, %v336_v16  ;;  %v318_v60 = vmul.f32 %v876_v46, %v288_v14 }
  0x8e   : > { %v332_v15 = vpop.permute.xlu1 %331  ;;  %v293_v18 = vpop.permute.xlu0 %292 }
  0x8f   : > { %v361_v49 = vmul.f32 %v872_v39, %v332_v15  ;;  %v360_v53 = vmul.f32 %v351_v42, %v332_v15  ;;  %v320_v54 = vmul.f32 %v876_v46, %v293_v18  ;;  %v321_v58 = vmul.f32 %v874_v44, %v293_v18 }
  0x91   : > { %v369_v0 = vadd.f32 %v361_v49, %v319_v56  ;;  %v368_v2 = vadd.f32 %v360_v53, %v318_v60  ;;  %v370_v3 = vadd.f32 %v362_v52, %v320_v54  ;;  %v371_v6 = vadd.f32 %v363_v57, %v321_v58 }
  0x92   : > { %v861_v22 = vpop.permute.xlu0 %282 }
  0x93   : > { %v386_v17 = vpop.permute.xlu1 %385  ;;  %v316_v21 = vmul.f32 %v876_v46, %v861_v22  ;;  %v317_v23 = vmul.f32 %v874_v44, %v861_v22 }
  0x94   : > { %v412_v7 = vmul.f32 %v879_v50, %v386_v17  ;;  %v413_v8 = vmul.f32 %v881_v51, %v386_v17 }
  0x96   : > { %v420_v18 = vadd.f32 %v412_v7, %v370_v3  ;;  %v421_v19 = vadd.f32 %v413_v8, %v371_v6 }
  0x97   : > { %v868_v33 = vpop.permute.xlu0 %377 }
  0x98   : > { %v858_v20 = vpop.permute.xlu1 %327  ;;  %v408_v36 = vmul.f32 %v879_v50, %v868_v33  ;;  %v409_v22 = vmul.f32 %v881_v51, %v868_v33 }
  0x99   : > { %v359_v17 = vmul.f32 %v872_v39, %v858_v20 }
  0x9b   : > { %v367_v34 = vadd.f32 %v359_v17, %v317_v23 }
  0x9c   : > { %v436_v47 = vpop.permute.xlu0 %435 }
  0x9d   : > { %v382_v24 = vpop.permute.xlu1 %381  ;;  %v462_v11 = vmul.f32 %v451_v61, %v436_v47  ;;  %v463_v12 = vmul.f32 %v884_v55, %v436_v47  ;;  %v417_v56 = vadd.f32 %v409_v22, %v367_v34 }
  0x9e   : > { %v411_v59 = vmul.f32 %v881_v51, %v382_v24  ;;  %v410_v62 = vmul.f32 %v879_v50, %v382_v24  ;;  %v358_v24 = vmul.f32 %v351_v42, %v858_v20 }
  0x9f   : > { %v470_v26 = vadd.f32 %v462_v11, %v420_v18  ;;  %v471_v27 = vadd.f32 %v463_v12, %v421_v19 }
  0xa0   : > { %v428_v4 = vpop.permute.xlu0 %427  ;;  %v419_v9 = vadd.f32 %v411_v59, %v369_v0  ;;  %v418_v10 = vadd.f32 %v410_v62, %v368_v2  ;;  %v366_v32 = vadd.f32 %v358_v24, %v316_v21 }
  0xa1   : > { %v458_v41 = vmul.f32 %v451_v61, %v428_v4  ;;  %v459_v20 = vmul.f32 %v884_v55, %v428_v4 }
  0xa2   : > { %v870_v35 = vpop.permute.xlu1 %277  ;;  %v416_v54 = vadd.f32 %v408_v36, %v366_v32 }
  0xa3   : > { %v314_v57 = vmul.f32 %v876_v46, %v870_v35  ;;  %v315_v33 = vmul.f32 %v874_v44, %v870_v35 }
  0xa5   : > { %v485_v15 = vpop.permute.xlu0 %484 }
  0xa7   : > { %v324_v45 = vpop.permute.xlu1 %323 }
  0xa8   : > { %v356_v47 = vmul.f32 %v351_v42, %v324_v45  ;;  %v357_v48 = vmul.f32 %v872_v39, %v324_v45  ;;  %v466_v39 = vadd.f32 %v458_v41, %v416_v54  ;;  %v467_v45 = vadd.f32 %v459_v20, %v417_v56 }
  0xaa   : > { %v364_v62 = vadd.f32 %v356_v47, %v314_v57 }
  0xac   : > { %v432_v63 = vpop.permute.xlu1 %431 }
  0xad   : > { %v461_v1 = vmul.f32 %v884_v55, %v432_v63  ;;  %v460_v5 = vmul.f32 %v451_v61, %v432_v63  ;;  %v365_v63 = vadd.f32 %v357_v48, %v315_v33 }
  0xaf   : > { %v469_v13 = vadd.f32 %v461_v1, %v419_v9  ;;  %v468_v16 = vadd.f32 %v460_v5, %v418_v10 }
  0xb1   : > { %v374_v14 = vpop.permute.xlu1 %373  ;;  %v497_v25 = vadd.f32 %v485_v15, %v469_v13  ;;  %v496_v28 = vadd.f32 %v485_v15, %v468_v16  ;;  %v272_v13 = vld [vmem:[%s936_s3] sm:$0xf]  ;;  %v519_v15 = vpop.permute.xlu0 %518 }
  0xb2   : > { %v406_v59 = vmul.f32 %v879_v50, %v374_v14  ;;  %v407_v60 = vmul.f32 %v881_v51, %v374_v14 }
  0xb3   : > { %v505_v37 = vmax.f32 %v497_v25, 0.0  ;;  %v504_v43 = vmax.f32 %v496_v28, 0.0 }
  0xb4   : > { %v414_v2 = vadd.f32 %v406_v59, %v364_v62  ;;  %v415_v35 = vadd.f32 %v407_v60, %v365_v63 }
  0xb5   : > { %v513_v58 = vmin.f32 %v505_v37, 6.0  ;;  %v512_v42 = vmin.f32 %v504_v43, 6.0 }
  0xb6   : > { %v490_v29 = vpop.permute.xlu1 %489 }
  0xb7   : > { %v498_v30 = vadd.f32 %v490_v29, %v470_v26  ;;  %v499_v31 = vadd.f32 %v490_v29, %v471_v27 }
  0xb9   : > { %v507_v38 = vmax.f32 %v499_v31, 0.0  ;;  %v506_v40 = vmax.f32 %v498_v30, 0.0 }
  0xbb   : > { %v424_v49 = vpop.permute.xlu1 %423  ;;  %v515_v52 = vmin.f32 %v507_v38, 6.0  ;;  %v514_v53 = vmin.f32 %v506_v40, 6.0 }
  0xbc   : > { %v456_v0 = vmul.f32 %v451_v61, %v424_v49  ;;  %v457_v1 = vmul.f32 %v884_v55, %v424_v49 }
  0xbd   : > { %549 = vmatprep.subr.mxu0 %v515_v52 }
  0xbe   : > { %550 = vmatpush1.msra.mxu0 %v514_v53  ;;  %v464_v51 = vadd.f32 %v456_v0, %v414_v2  ;;  %v465_v5 = vadd.f32 %v457_v1, %v415_v35 }
  0xbf   : > { %551 = vmatprep.subr.mxu0 %v513_v58 }
  0xc0   : > { %v480_v46 = vpop.permute.xlu1 %479  ;;  %552 = vmatpush1.msra.mxu0 %v512_v42 }
  0xc1   : > { %v494_v44 = vadd.f32 %v480_v46, %v466_v39  ;;  %v495_v3 = vadd.f32 %v480_v46, %v467_v45 }
  0xc3   : > { %v502_v50 = vmax.f32 %v494_v44, 0.0  ;;  %v503_v4 = vmax.f32 %v495_v3, 0.0 }
  0xc4   : > { %v475_v6 = vpop.permute.xlu1 %474 }
  0xc5   : > { %v510_v7 = vmin.f32 %v502_v50, 6.0  ;;  %v511_v8 = vmin.f32 %v503_v4, 6.0  ;;  %v492_v9 = vadd.f32 %v475_v6, %v464_v51  ;;  %v493_v10 = vadd.f32 %v475_v6, %v465_v5 }
  0xc7   : > { %v500_v11 = vmax.f32 %v492_v9, 0.0  ;;  %v501_v61 = vmax.f32 %v493_v10, 0.0  ;;  %553 = vmatprep.subr.mxu0 %v511_v8 }
  0xc8   : > { %554 = vmatpush1.msra.mxu0 %v510_v7 }
  0xc9   : > { %v508_v55 = vmin.f32 %v500_v11, 6.0  ;;  %v509_v12 = vmin.f32 %v501_v61, 6.0 }
  0xcb   : > { %555 = vmatprep.subr.mxu0 %v509_v12 }
  0xcc   : > { %556 = vmatpush1.msra.mxu0 %v508_v55 }
  0xcd   : > { %697 = vmatmul.mubr.msk.f32.vlgmr.msra.gmra.mxu0 %vm521_vm0, %v272_v13 }
 0x18d   : > { %v591_v14 = vpop.f32.mrf.mxu0 }
 0x18e   : > { %v592_v18 = vadd.f32 %v591_v14, %v519_v15 }
 0x18f   : > { %v593_v16 = vpop.f32.mrf.mxu0 }
 0x190   : > { %v594_v19 = vadd.f32 %v593_v16, %v519_v15 }
 0x192   : > { %v598_v21 = vcombine.low %v592_v18, %v594_v19 }
 0x194   : > { %600 = vst [vmem:[%s262_s27] sm:$0xff] %v598_v21 }
 0x195 PF: > { %s15_s20 = sadd.s32 1, %s770_s20   ;;  %s939_s18 = smov %s766_s19 }
 0x196   : > { %p12_p5 = scmp.ge.s32.totalorder %s15_s20, 4   ;;  %s940_s19 = smov %s942_s21 }
 0x198   :  { %14 = sbr.rel (!%p12_p5) target bundleno = 2 (0x2), region = 70 }

</bundles_post_ra>
